<compile_context>
chip_gen: v5e
topology: v5e:2x2
jax: 0.10.0
libtpu: 0.0.40
codegen_flags: <defaults>
</compile_context>

<pallas_src>
import jax
import jax.numpy as jnp
from jax.experimental import pallas as pl
from jax.experimental.pallas import tpu as pltpu


def _round_up(n, m):
    return ((n + m - 1) // m) * m


def fcv_kernel(x_ref, w0t_ref, b0_ref, w1t_ref, b1_ref, w2t_ref, b2_ref, out_ref):
    # Feature-major: activations are (features, batch_tile) -> lane-dense.
    # Layer 0: (H0, D) x (TB, D) contracted over D -> (H0, TB).  Both operands
    # keep the (tiny) contraction dim on lanes; MXU accumulates in f32.
    h0 = jax.lax.dot_general(
        w0t_ref[...], x_ref[...],
        dimension_numbers=(((1,), (1,)), ((), ())),
        preferred_element_type=jnp.float32)
    h0 = jnp.maximum(h0 + b0_ref[...], 0.0)                            # (H0, TB)
    # Layer 1: (H1, H0) @ (H0, TB) -> (H1, TB)
    h1 = jnp.dot(w1t_ref[...], h0, preferred_element_type=jnp.float32)
    h1 = jnp.maximum(h1 + b1_ref[...], 0.0)                            # (H1, TB)
    # Layer 2: (1, H1) @ (H1, TB) -> (1, TB), lane-dense final row.
    v = jnp.dot(w2t_ref[...], h1, preferred_element_type=jnp.float32)
    out_ref[...] = (v + b2_ref[0])[None].astype(out_ref.dtype)         # (1,1,TB)


def fcv_forward(x, params, *, batch_tile=1024, compute_dtype=None):
    """x: (B, input_dim) or (input_dim,) float32 -> (B, 1) float32.

    Matches PyTorch FCV.forward (including _format's unsqueeze of an
    unbatched state).
    """
    w0, b0 = params["w0"], params["b0"]
    w1, b1 = params["w1"], params["b1"]
    w2, b2 = params["w2"], params["b2"]

    x = jnp.asarray(x, jnp.float32)
    if x.ndim == 1:                       # mirrors FCV._format unsqueeze(0)
        x = x[None, :]
    B, D = x.shape
    H0, H1 = w0.shape[1], w1.shape[1]

    # Batch tile: multiple of 128 (lane-dense, sublane-aligned), no larger
    # than the padded batch -> the (8,128) block constraint always holds.
    tb = min(_round_up(max(batch_tile, 1), 128), _round_up(B, 128))
    B_pad = _round_up(B, tb)
    if B_pad != B:
        x = jnp.pad(x, ((0, B_pad - B), (0, 0)))
    num_tiles = B_pad // tb

    # Feature-major parameter layout (tiny one-time reshapes outside the kernel).
    w0t = w0.T            # (H0, D)
    w1t = w1.T            # (H1, H0)
    w2t = w2.T            # (1, H1)
    b0c = b0.T            # (H0, 1)
    b1c = b1.T            # (H1, 1)
    b2s = b2.reshape(-1)  # (1,)  scalar bias -> SMEM

    if compute_dtype is not None:
        # bf16 MXU operands (v6e/v7x): halves the HBM read of x. Accumulation
        # stays f32 via preferred_element_type; bias-add/ReLU stay f32.
        x = x.astype(compute_dtype)
        w0t = w0t.astype(compute_dtype)
        w1t = w1t.astype(compute_dtype)
        w2t = w2t.astype(compute_dtype)

    rep = lambda shape: pl.BlockSpec(shape, lambda i: (0, 0))  # grid-resident

    out = pl.pallas_call(
        fcv_kernel,
        out_shape=jax.ShapeDtypeStruct((num_tiles, 1, tb), jnp.float32),
        grid=(num_tiles,),
        in_specs=[
            pl.BlockSpec((tb, D), lambda i: (i, 0)),            # x batch tile
            rep((H0, D)),                                       # w0^T
            rep((H0, 1)),                                       # b0 (column)
            rep((H1, H0)),                                      # w1^T
            rep((H1, 1)),                                       # b1 (column)
            rep((1, H1)),                                       # w2^T
            pl.BlockSpec(memory_space=pltpu.MemorySpace.SMEM),  # b2 scalar
        ],
        out_specs=pl.BlockSpec((1, 1, tb), lambda i: (i, 0, 0)),
        compiler_params=pltpu.CompilerParams(
            dimension_semantics=("parallel",)),
    )(x, w0t, b0c, w1t, b1c, w2t, b2s)

    # Lane-dense (num_tiles, 1, tb) slab -> (B, 1); row-major flatten preserves
    # batch order; drop the padded rows.
    return out.reshape(B_pad, 1)[:B]


def init_fcv_params(key, input_dim, hidden_dims=(32, 32)):
    """Deterministic init mimicking PyTorch nn.Linear default U(-1/sqrt(fan_in), +)."""
    dims = (input_dim,) + tuple(hidden_dims) + (1,)
    params = {}
    for li in range(len(dims) - 1):
        fan_in, fan_out = dims[li], dims[li + 1]
        key, kw, kb = jax.random.split(key, 3)
        bound = 1.0 / jnp.sqrt(jnp.float32(fan_in))
        params[f"w{li}"] = jax.random.uniform(
            kw, (fan_in, fan_out), jnp.float32, -bound, bound)
        params[f"b{li}"] = jax.random.uniform(
            kb, (1, fan_out), jnp.float32, -bound, bound)
    return params


def fcv_reference(x, params):
    """Plain JAX reference for correctness check (batch-major, like PyTorch)."""
    h = jnp.maximum(x @ params["w0"] + params["b0"], 0.0)
    h = jnp.maximum(h @ params["w1"] + params["b1"], 0.0)
    return h @ params["w2"] + params["b2"]


if __name__ == "__main__":
    key = jax.random.PRNGKey(0)
    input_dim = 16

    kp, kx1, kx2 = jax.random.split(key, 3)
    params = init_fcv_params(kp, input_dim, hidden_dims=(32, 32))

    # Case 1: small batch (pads to one 128-wide lane-dense tile).
    x1 = jax.random.normal(kx1, (64, input_dim), jnp.float32)
    out1 = jax.block_until_ready(fcv_forward(x1, params))
    ref1 = fcv_reference(x1, params)
    assert out1.shape == (64, 1), out1.shape
    assert jnp.allclose(out1, ref1, atol=1e-5, rtol=1e-5)

    # Case 2: multi-tile grid (exercises the parallel batch axis).
    x2 = jax.random.normal(kx2, (384, input_dim), jnp.float32)
    out2 = jax.block_until_ready(fcv_forward(x2, params, batch_tile=128))
    ref2 = fcv_reference(x2, params)
    assert out2.shape == (384, 1), out2.shape
    assert jnp.allclose(out2, ref2, atol=1e-5, rtol=1e-5)

    # Case 3: bf16 operand path (v6e/v7x HBM-traffic optimization), f32 accumulate.
    out3 = jax.block_until_ready(
        fcv_forward(x2, params, batch_tile=128, compute_dtype=jnp.bfloat16))
    assert jnp.allclose(out3, ref2, atol=1e-1, rtol=1e-1)

    # Case 4: unbatched state (mirrors PyTorch _format unsqueeze path).
    out4 = jax.block_until_ready(fcv_forward(x1[0], params))
    assert out4.shape == (1, 1), out4.shape
    assert jnp.allclose(out4, ref1[:1], atol=1e-5, rtol=1e-5)

    print("KERNEL_OK")
</pallas_src>

<mosaic_0001>
module attributes {stable_mosaic.version = 11 : i64} {
  func.func @fcv_kernel(%arg0: i32, %arg1: memref<128x16xf32, #tpu.memory_space<vmem>>, %arg2: memref<32x16xf32, #tpu.memory_space<vmem>>, %arg3: memref<32x1xf32, #tpu.memory_space<vmem>>, %arg4: memref<32x32xf32, #tpu.memory_space<vmem>>, %arg5: memref<32x1xf32, #tpu.memory_space<vmem>>, %arg6: memref<1x32xf32, #tpu.memory_space<vmem>>, %arg7: memref<1xf32, #tpu.memory_space<smem>>, %arg8: memref<1x1x128xf32, #tpu.memory_space<vmem>>) attributes {dimension_semantics = [#tpu.dimension_semantics<parallel>], iteration_bounds = array<i64: 1>, scalar_prefetch = 0 : i64, scratch_operands = 0 : i64, tpu.core_type = #tpu.core_type<tc>, window_params = [{transform_indices = @transform_0, window_bounds = array<i64: 128, 16>}, {pipeline_mode = #tpu.pipeline_mode<synchronous>, transform_indices = @transform_1, window_bounds = array<i64: 32, 16>}, {pipeline_mode = #tpu.pipeline_mode<synchronous>, transform_indices = @transform_2, window_bounds = array<i64: 32, 1>}, {pipeline_mode = #tpu.pipeline_mode<synchronous>, transform_indices = @transform_3, window_bounds = array<i64: 32, 32>}, {pipeline_mode = #tpu.pipeline_mode<synchronous>, transform_indices = @transform_4, window_bounds = array<i64: 32, 1>}, {pipeline_mode = #tpu.pipeline_mode<synchronous>, transform_indices = @transform_5, window_bounds = array<i64: 1, 32>}, {transform_indices = @transform_6, window_bounds = array<i64: 1>}, {transform_indices = @transform_7, window_bounds = array<i64: 1, 1, 128>}]} {
    %c0 = arith.constant 0 : index
    %c0_0 = arith.constant 0 : index
    %0 = vector.load %arg2[%c0, %c0_0] : memref<32x16xf32, #tpu.memory_space<vmem>>, vector<32x16xf32>
    %c0_1 = arith.constant 0 : index
    %c0_2 = arith.constant 0 : index
    %1 = vector.load %arg1[%c0_1, %c0_2] : memref<128x16xf32, #tpu.memory_space<vmem>>, vector<128x16xf32>
    %cst = arith.constant dense<0.000000e+00> : vector<32x128xf32>
    %2 = tpu.matmul %0, %1, %cst {dimension_numbers = #tpu.dot_dimension_numbers<[1], [1], [0], [0], [0, 0, 1, 0], [], []>} : vector<32x16xf32>, vector<128x16xf32>, vector<32x128xf32> -> vector<32x128xf32>
    %c0_3 = arith.constant 0 : index
    %c0_4 = arith.constant 0 : index
    %3 = vector.load %arg3[%c0_3, %c0_4] : memref<32x1xf32, #tpu.memory_space<vmem>>, vector<32x1xf32>
    %4 = vector.broadcast %3 : vector<32x1xf32> to vector<32x128xf32>
    %5 = arith.addf %2, %4 : vector<32x128xf32>
    %cst_5 = arith.constant 0.000000e+00 : f32
    %6 = vector.broadcast %cst_5 : f32 to vector<32x128xf32>
    %7 = arith.maximumf %5, %6 : vector<32x128xf32>
    %c0_6 = arith.constant 0 : index
    %c0_7 = arith.constant 0 : index
    %8 = vector.load %arg4[%c0_6, %c0_7] : memref<32x32xf32, #tpu.memory_space<vmem>>, vector<32x32xf32>
    %cst_8 = arith.constant dense<0.000000e+00> : vector<32x128xf32>
    %9 = tpu.matmul %8, %7, %cst_8 {dimension_numbers = #tpu.dot_dimension_numbers<[1], [0], [0], [1], [0, 0, 1, 1], [], []>} : vector<32x32xf32>, vector<32x128xf32>, vector<32x128xf32> -> vector<32x128xf32>
    %c0_9 = arith.constant 0 : index
    %c0_10 = arith.constant 0 : index
    %10 = vector.load %arg5[%c0_9, %c0_10] : memref<32x1xf32, #tpu.memory_space<vmem>>, vector<32x1xf32>
    %11 = vector.broadcast %10 : vector<32x1xf32> to vector<32x128xf32>
    %12 = arith.addf %9, %11 : vector<32x128xf32>
    %cst_11 = arith.constant 0.000000e+00 : f32
    %13 = vector.broadcast %cst_11 : f32 to vector<32x128xf32>
    %14 = arith.maximumf %12, %13 : vector<32x128xf32>
    %c0_12 = arith.constant 0 : index
    %c0_13 = arith.constant 0 : index
    %15 = vector.load %arg6[%c0_12, %c0_13] : memref<1x32xf32, #tpu.memory_space<vmem>>, vector<1x32xf32>
    %cst_14 = arith.constant dense<0.000000e+00> : vector<1x128xf32>
    %16 = tpu.matmul %15, %14, %cst_14 {dimension_numbers = #tpu.dot_dimension_numbers<[1], [0], [0], [1], [0, 0, 1, 1], [], []>} : vector<1x32xf32>, vector<32x128xf32>, vector<1x128xf32> -> vector<1x128xf32>
    %c0_15 = arith.constant 0 : index
    %17 = memref.load %arg7[%c0_15] : memref<1xf32, #tpu.memory_space<smem>>
    %18 = vector.broadcast %17 : f32 to vector<1x128xf32>
    %19 = arith.addf %16, %18 : vector<1x128xf32>
    %20 = vector.shape_cast %19 : vector<1x128xf32> to vector<1x1x128xf32>
    %c0_16 = arith.constant 0 : index
    %c0_17 = arith.constant 0 : index
    %c0_18 = arith.constant 0 : index
    %21 = vector.load %arg8[%c0_16, %c0_17, %c0_18] : memref<1x1x128xf32, #tpu.memory_space<vmem>>, vector<1x1x128xf32>
    tpu.vector_store %arg8[%c0_16, %c0_17, %c0_18], %20 {strides = array<i32>} : memref<1x1x128xf32, #tpu.memory_space<vmem>>, vector<1x1x128xf32>,
    return
  }
  func.func @transform_0(%arg0: i32) -> (i32, i32) {
    %c0_i32 = arith.constant 0 : i32
    %c0_i32_0 = arith.constant 0 : i32
    return %arg0, %c0_i32 : i32, i32
  }
  func.func @transform_1(%arg0: i32) -> (i32, i32) {
    %c0_i32 = arith.constant 0 : i32
    %c0_i32_0 = arith.constant 0 : i32
    %c0_i32_1 = arith.constant 0 : i32
    return %c0_i32, %c0_i32_0 : i32, i32
  }
  func.func @transform_2(%arg0: i32) -> (i32, i32) {
    %c0_i32 = arith.constant 0 : i32
    %c0_i32_0 = arith.constant 0 : i32
    %c0_i32_1 = arith.constant 0 : i32
    return %c0_i32, %c0_i32_0 : i32, i32
  }
  func.func @transform_3(%arg0: i32) -> (i32, i32) {
    %c0_i32 = arith.constant 0 : i32
    %c0_i32_0 = arith.constant 0 : i32
    %c0_i32_1 = arith.constant 0 : i32
    return %c0_i32, %c0_i32_0 : i32, i32
  }
  func.func @transform_4(%arg0: i32) -> (i32, i32) {
    %c0_i32 = arith.constant 0 : i32
    %c0_i32_0 = arith.constant 0 : i32
    %c0_i32_1 = arith.constant 0 : i32
    return %c0_i32, %c0_i32_0 : i32, i32
  }
  func.func @transform_5(%arg0: i32) -> (i32, i32) {
    %c0_i32 = arith.constant 0 : i32
    %c0_i32_0 = arith.constant 0 : i32
    %c0_i32_1 = arith.constant 0 : i32
    return %c0_i32, %c0_i32_0 : i32, i32
  }
  func.func @transform_6(%arg0: i32) -> i32 {
    %c0_i32 = arith.constant 0 : i32
    %c0_i32_0 = arith.constant 0 : i32
    return %c0_i32 : i32
  }
  func.func @transform_7(%arg0: i32) -> (i32, i32, i32) {
    %c0_i32 = arith.constant 0 : i32
    %c0_i32_0 = arith.constant 0 : i32
    %c0_i32_1 = arith.constant 0 : i32
    return %arg0, %c0_i32, %c0_i32_0 : i32, i32, i32
  }
}

</mosaic_0001>

<bundles_post_ra>
// kernel: tpu_custom_call.1
= control target key start
LH: loop header
LB: loop body
LE: loop exit
PB: predicated region body
PF: predicated region fallthrough
CT: control target
= control target key end

     0   :  { %vm72_vm0 = vcmask 130048   ;;  %s543_s0 = inlined_call_operand.vmem [shape: f32[128,16], index: 0, kind: input, shape index: {}]   ;;  %s544_s1 = inlined_call_operand.vmem [shape: f32[32,16], index: 1, kind: input, shape index: {}]   ;;  %s545_s2 = inlined_call_operand.vmem [shape: f32[32,1], index: 2, kind: input, shape index: {}]   ;;  %s546_s3 = inlined_call_operand.vmem [shape: f32[32,32], index: 3, kind: input, shape index: {}]   ;;  %s547_s4 = inlined_call_operand.vmem [shape: f32[32,1], index: 4, kind: input, shape index: {}]   ;;  %s548_s5 = inlined_call_operand.vmem [shape: f32[1,32], index: 5, kind: input, shape index: {}]   ;;  %s549_s6 = inlined_call_operand.<no memory space> [shape: f32[1], index: 6, kind: input, shape index: {}]   ;;  %s550_s7 = inlined_call_operand.hbm [shape: f32[1,1,128], index: 7, kind: output, shape index: {}]  }
   0x1   :  { %v47_v0 = vld [vmem:[%s543_s0 + $0x78] sm:$0xff]  ;;  %v46_v1 = vld [vmem:[%s543_s0 + $0x70] sm:$0xff] }
   0x2   :  { %308 = vmatpush.xpose.msk.msra.mxu3 %vm72_vm0, %v47_v0  ;;  %283 = vmatpush.xpose.msk.msra.mxu0 %vm72_vm0, %v47_v0 }
   0x3   :  { %13 = vsyncpa [#allocation4], 0  ;;  %v45_v2 = vld [vmem:[%s543_s0 + $0x68] sm:$0xff]  ;;  %v44_v3 = vld [vmem:[%s543_s0 + $0x60] sm:$0xff]  ;;  %v355_v14 = vmov 0   ;;  %vm194_vm1 = vcmask 261120  }
   0x4   :  { %v43_v4 = vld [vmem:[%s543_s0 + $0x58] sm:$0xff]  ;;  %v42_v5 = vld [vmem:[%s543_s0 + $0x50] sm:$0xff]  ;;  %v41_v6 = vld [vmem:[%s543_s0 + $0x48] sm:$0xff]  ;;  %326 = vset.pattern.permute.xlu0 %v355_v14  ;;  %327 = vset.pattern.permute.xlu1 %v355_v14  ;;  %s356_s17 = smov [#allocation3]   ;;  %s274_s21 = sshll.u32 %s550_s7, 4  ;;  %s275_s21 = int_to_ptr.hbm [resolvable:$true] %s274_s21 }
   0x5   :  { %v40_v7 = vld [vmem:[%s543_s0 + $0x40] sm:$0xff]  ;;  %v39_v8 = vld [vmem:[%s543_s0 + $0x38] sm:$0xff]  ;;  %v38_v9 = vld [vmem:[%s543_s0 + $0x30] sm:$0xff]  ;;  %328 = vset.pattern.permute.xlu2 %v355_v14  ;;  %s272_s18 = sshll.u32 %s356_s17, 4  ;;  %s273_s18 = int_to_ptr.vmem [resolvable:$true] %s272_s18 }
   0x6   :  { %309 = vmatpush.xpose.msk.msra.mxu3 %vm72_vm0, %v46_v1  ;;  %284 = vmatpush.xpose.msk.msra.mxu0 %vm72_vm0, %v46_v1  ;;  %v37_v10 = vld [vmem:[%s543_s0 + $0x28] sm:$0xff]  ;;  %v51_v11 = vld [vmem:[%s545_s2 + $0x18] sm:$0xff]  ;;  %v36_v13 = vld [vmem:[%s543_s0 + $0x20] sm:$0xff] }
   0x7   :  { %v49_v12 = vld [vmem:[%s545_s2 + $0x8] sm:$0xff]  ;;  %69 = vperm.xlu0 %326, %v51_v11   ;;  %v35_v15 = vld [vmem:[%s543_s0 + $0x18] sm:$0xff]  ;;  %v50_v16 = vld [vmem:[%s545_s2 + $0x10] sm:$0xff] }
   0x8   :  { %59 = vperm.xlu1 %327, %v49_v12   ;;  %v48_v17 = vld [vmem:[%s545_s2] sm:$0xff]  ;;  %v34_v18 = vld [vmem:[%s543_s0 + $0x10] sm:$0xff]  ;;  %v33_v19 = vld [vmem:[%s543_s0 + $0x8] sm:$0xff] }
   0x9   :  { %v171_v20 = vld [vmem:[%s547_s4 + $0x8] sm:$0xff]  ;;  %v170_v21 = vld [vmem:[%s547_s4] sm:$0xff]  ;;  %v30_v25 = vld [vmem:[%s544_s1 + $0x10] sm:$0xff] }
   0xa   :  { %310 = vmatpush.xpose.msk.msra.mxu3 %vm72_vm0, %v45_v2  ;;  %285 = vmatpush.xpose.msk.msra.mxu0 %vm72_vm0, %v45_v2  ;;  %v32_v22 = vld [vmem:[%s543_s0] sm:$0xff]  ;;  %v29_v23 = vld [vmem:[%s544_s1 + $0x8] sm:$0xff]  ;;  %v31_v26 = vld [vmem:[%s544_s1 + $0x18] sm:$0xff]  ;;  %v242_v2 = vstv %s549_s6 }
   0xb   :  { %v28_v24 = vld [vmem:[%s544_s1] sm:$0xff]  ;;  %v173_v39 = vld [vmem:[%s547_s4 + $0x18] sm:$0xff]  ;;  %v172_v45 = vld [vmem:[%s547_s4 + $0x10] sm:$0xff] }
   0xc   :  { %191 = vperm.xlu2 %328, %v173_v39   ;;  %v166_v44 = vld [vmem:[%s546_s3] sm:$0xff]  ;;  %v167_v46 = vld [vmem:[%s546_s3 + $0x8] sm:$0xff]  ;;  %v168_v47 = vld [vmem:[%s546_s3 + $0x10] sm:$0xff] }
   0xd   :  { %v169_v48 = vld [vmem:[%s546_s3 + $0x18] sm:$0xff]  ;;  %v240_v1 = vld [vmem:[%s548_s5] sm:$0x1] }
   0xe   :  { %311 = vmatpush.xpose.msk.msra.mxu3 %vm72_vm0, %v44_v3  ;;  %286 = vmatpush.xpose.msk.msra.mxu0 %vm72_vm0, %v44_v3 }
   0xf   :  { %64 = vperm.xlu0 %326, %v50_v16  }
  0x10   :  { %54 = vperm.xlu1 %327, %v48_v17  }
  0x12   :  { %312 = vmatpush.xpose.msk.msra.mxu3 %vm72_vm0, %v43_v4  ;;  %287 = vmatpush.xpose.msk.msra.mxu0 %vm72_vm0, %v43_v4 }
  0x14   :  { %186 = vperm.xlu2 %328, %v172_v45  }
  0x16   :  { %313 = vmatpush.xpose.msk.msra.mxu3 %vm72_vm0, %v42_v5  ;;  %288 = vmatpush.xpose.msk.msra.mxu0 %vm72_vm0, %v42_v5 }
  0x17   :  { %181 = vperm.xlu0 %326, %v171_v20  }
  0x18   :  { %176 = vperm.xlu1 %327, %v170_v21  }
  0x1a   :  { %314 = vmatpush.xpose.msk.msra.mxu3 %vm72_vm0, %v41_v6  ;;  %289 = vmatpush.xpose.msk.msra.mxu0 %vm72_vm0, %v41_v6 }
  0x1e   :  { %315 = vmatpush.xpose.msk.msra.mxu3 %vm72_vm0, %v40_v7  ;;  %290 = vmatpush.xpose.msk.msra.mxu0 %vm72_vm0, %v40_v7 }
  0x22   :  { %316 = vmatpush.xpose.msk.msra.mxu3 %vm72_vm0, %v39_v8  ;;  %291 = vmatpush.xpose.msk.msra.mxu0 %vm72_vm0, %v39_v8 }
  0x26   :  { %317 = vmatpush.xpose.msk.msra.mxu3 %vm72_vm0, %v38_v9  ;;  %292 = vmatpush.xpose.msk.msra.mxu0 %vm72_vm0, %v38_v9 }
  0x2a   :  { %318 = vmatpush.xpose.msk.msra.mxu3 %vm72_vm0, %v37_v10  ;;  %293 = vmatpush.xpose.msk.msra.mxu0 %vm72_vm0, %v37_v10 }
  0x2e   :  { %319 = vmatpush.xpose.msk.msra.mxu3 %vm72_vm0, %v36_v13  ;;  %294 = vmatpush.xpose.msk.msra.mxu0 %vm72_vm0, %v36_v13 }
  0x32   :  { %320 = vmatpush.xpose.msk.msra.mxu3 %vm72_vm0, %v35_v15  ;;  %295 = vmatpush.xpose.msk.msra.mxu0 %vm72_vm0, %v35_v15 }
  0x36   :  { %321 = vmatpush.xpose.msk.msra.mxu3 %vm72_vm0, %v34_v18  ;;  %296 = vmatpush.xpose.msk.msra.mxu0 %vm72_vm0, %v34_v18 }
  0x3a   :  { %322 = vmatpush.xpose.msk.msra.mxu3 %vm72_vm0, %v33_v19  ;;  %297 = vmatpush.xpose.msk.msra.mxu0 %vm72_vm0, %v33_v19 }
  0x3e   :  { %323 = vmatpush.xpose.msk.msra.mxu3 %vm72_vm0, %v32_v22  ;;  %298 = vmatpush.xpose.msk.msra.mxu0 %vm72_vm0, %v32_v22 }
  0x41   :  { %300 = vmatmul.msk.f32.vlgmr.msra.gmra.mxu3 %vm72_vm0, %v29_v23  ;;  %299 = vmatmul.msk.f32.vlgmr.msra.gmra.mxu0 %vm72_vm0, %v28_v24 }
  0x49   :  { %301 = vmatmul.msk.f32.gmra.mxu3 %vm72_vm0, %v30_v25 }
  0x51   :  { %302 = vmatmul.msk.f32.gmra.mxu3 %vm72_vm0, %v31_v26 }
  0x66   :  { %v192_v51 = vpop.permute.xlu2 %191 }
  0x6e   :  { %v187_v53 = vpop.permute.xlu2 %186 }
  0x79   :  { %v70_v28 = vpop.permute.xlu0 %69 }
  0x7a   :  { %v60_v30 = vpop.permute.xlu1 %59 }
  0x81   :  { %v65_v31 = vpop.permute.xlu0 %64 }
  0x82   :  { %v55_v38 = vpop.permute.xlu1 %54 }
  0x89   :  { %v182_v57 = vpop.permute.xlu0 %181 }
  0x8a   :  { %v177_v60 = vpop.permute.xlu1 %176 }
  0xbe   :  { %v150_v35 = vpop.f32.mrf.mxu0 }
  0xbf   :  { %v151_v41 = vadd.f32 %v150_v35, %v55_v38 }
  0xc1   :  { %v162_v43 = vmax.f32 %v151_v41, 0.0 }
  0xc4   :  { %v153_v27 = vpop.f32.mrf.mxu3 }
  0xc5   :  { %v154_v36 = vadd.f32 %v153_v27, %v60_v30 }
  0xc7   :  { %v163_v42 = vmax.f32 %v154_v36, 0.0 }
  0xcc   :  { %v156_v29 = vpop.f32.mrf.mxu3 }
  0xcd   :  { %v157_v33 = vadd.f32 %v156_v29, %v65_v31 }
  0xcf   :  { %v164_v40 = vmax.f32 %v157_v33, 0.0 }
  0xd4   :  { %v159_v32 = vpop.f32.mrf.mxu3 }
  0xd5   :  { %v160_v34 = vadd.f32 %v159_v32, %v70_v28 }
  0xd7   :  { %v165_v37 = vmax.f32 %v160_v34, 0.0 }
  0xd9   :  { %219 = vmatpush.msra.mxu1 %v165_v37 }
  0xdb   :  { %220 = vmatpush.msra.mxu1 %v164_v40 }
  0xdd   :  { %221 = vmatpush.msra.mxu1 %v163_v42 }
  0xdf   :  { %222 = vmatpush.msra.mxu1 %v162_v43 }
  0xe0   :  { %303 = vmatmul.msk.f32.vlgmr.msra.gmra.mxu1 %vm194_vm1, %v166_v44 }
  0xe8   :  { %304 = vmatmul.msk.f32.gmra.mxu1 %vm194_vm1, %v167_v46 }
  0xf0   :  { %305 = vmatmul.msk.f32.gmra.mxu1 %vm194_vm1, %v168_v47 }
  0xf8   :  { %306 = vmatmul.msk.f32.gmra.mxu1 %vm194_vm1, %v169_v48 }
 0x15d   :  { %v224_v49 = vpop.f32.mrf.mxu1 }
 0x15e   :  { %v225_v61 = vadd.f32 %v224_v49, %v177_v60 }
 0x160   :  { %v236_v0 = vmax.f32 %v225_v61, 0.0 }
 0x165   :  { %v227_v50 = vpop.f32.mrf.mxu1 }
 0x166   :  { %v228_v58 = vadd.f32 %v227_v50, %v182_v57 }
 0x168   :  { %v237_v63 = vmax.f32 %v228_v58, 0.0 }
 0x16d   :  { %v230_v52 = vpop.f32.mrf.mxu1 }
 0x16e   :  { %v231_v55 = vadd.f32 %v230_v52, %v187_v53 }
 0x170   :  { %v238_v62 = vmax.f32 %v231_v55, 0.0 }
 0x175   :  { %v233_v54 = vpop.f32.mrf.mxu1 }
 0x176   :  { %v234_v56 = vadd.f32 %v233_v54, %v192_v51 }
 0x178   :  { %v239_v59 = vmax.f32 %v234_v56, 0.0 }
 0x17a   :  { %258 = vmatpush.msra.mxu2 %v239_v59 }
 0x17c   :  { %259 = vmatpush.msra.mxu2 %v238_v62 }
 0x17e   :  { %260 = vmatpush.msra.mxu2 %v237_v63 }
 0x180   :  { %261 = vmatpush.msra.mxu2 %v236_v0 }
 0x181   :  { %307 = vmatmul.msk.f32.vlgmr.msra.gmra.mxu2 %vm194_vm1, %v240_v1 }
 0x204   :  { %v263_v3 = vpop.f32.mrf.mxu2 }
 0x205   :  { %v264_v4 = vadd.f32 %v263_v3, %v242_v2 }
 0x207   :  { %266 = vst [vmem:[#allocation3] sm:$0x1] %v264_v4 }
 0x208   :  { %277 = dma.vmem_to_hbm [thread:$0]  %s273_s18, 16, %s275_s21, [#allocation4]  }
 0x209   :  { %353 = dma.done.wait [#allocation4], 16  }
 0x20a   :  { %354 = vsyncadd [#allocation4], 4294967280 }
 0x20b   :  { %282 = vsyncpa [#allocation4], 1 }

</bundles_post_ra>
